<compile_context>
chip_gen: v7x
topology: tpu7x:2x2x1
jax: 0.10.0
libtpu: 0.0.40
codegen_flags: <defaults>
</compile_context>

<pallas_src>
import functools

import jax
import jax.numpy as jnp
from jax.experimental import pallas as pl
from jax.experimental.pallas import tpu as pltpu

# ----- small configuration consistent with the module's forward -----
IMAGE_SIZE = (16, 16)   # H, W
PATCH_SIZE = 8
CHANNELS = 4
EMBED_DIM = 128         # lane-dense embedding dim (multiple of 128)


# ---------------- Pallas kernel ----------------

def _patch_proj_kernel(x_ref, w_ref, b_ref, o_ref):
    """One row-tile of the patch projection GEMM.

    x_ref: (tm, K)  bf16  im2col'd patches (K = C*P*P on the lane axis)
    w_ref: (K, D)   bf16  Conv2d weight reshaped to (c*P*P, D), resident in VMEM
    b_ref: (1, D)   f32   Conv2d bias
    o_ref: (tm, D)        output tokens for this row tile
    """
    acc = jnp.dot(x_ref[...], w_ref[...], preferred_element_type=jnp.float32)
    o_ref[...] = (acc + b_ref[...]).astype(o_ref.dtype)


# ---------------- wrappers ----------------

def prepare_patch_proj(w_conv, b_conv, *, compute_dtype=jnp.bfloat16):
    """One-time re-layout of nn.Conv2d(kernel=stride=P) parameters.

    w_conv: (D, C, P, P) -> (C*P*P, D) in `compute_dtype` (bf16 MXU operands by
            default; bf16 operands run at native MXU rate on v5e/v6e/v7x).
    b_conv: (D,)         -> (1, D) f32 (bias add happens in f32 on the VPU).
    """
    D, C, P, _ = w_conv.shape
    w_mat = jnp.transpose(w_conv, (1, 2, 3, 0)).reshape(C * P * P, D)
    return w_mat.astype(compute_dtype), b_conv.reshape(1, D).astype(jnp.float32)


def patch_embedding(im, w_mat, b_row, *, patch_size, out_dtype=jnp.float32,
                    max_row_tile=256):
    """PatchEmbedding.forward: strided conv projection -> (B, num_patches, D).

    im   : (B, C, H, W)   NCHW image batch
    w_mat: (C*P*P, D)     prepared Conv2d weight (see prepare_patch_proj)
    b_row: (1, D)         prepared Conv2d bias
    """
    B, C, H, W = im.shape
    P = patch_size
    if H % P != 0 or W % P != 0:
        raise ValueError('image dimensions must be divisible by the patch size')
    gh, gw = H // P, W // P
    N = gh * gw
    K, D = w_mat.shape
    assert K == C * P * P

    # im2col in the wrapper (cheap XLA transpose; ~2x image bytes of HBM traffic):
    # (B, C, H, W) -> (b, gi, gj, c, ph, pw) -> (B*N, C*P*P).  Cast operands to the
    # weight dtype (bf16) once here -- no in-kernel casts.
    x = im.reshape(B, C, gh, P, gw, P).transpose(0, 2, 4, 1, 3, 5)
    x = x.reshape(B * N, K).astype(w_mat.dtype)

    M = B * N
    # Row tile: whole matrix if small (single grid step for the toy config),
    # otherwise fixed tiles so v7x's two TensorCores each get many pipelined steps.
    if M <= max_row_tile:
        tm = M
    else:
        tm = max_row_tile
    m_pad = pl.cdiv(M, tm) * tm
    if m_pad != M:
        x = jnp.pad(x, ((0, m_pad - M), (0, 0)))

    out = pl.pallas_call(
        _patch_proj_kernel,
        out_shape=jax.ShapeDtypeStruct((m_pad, D), out_dtype),
        grid=(m_pad // tm,),
        in_specs=[
            # Row tile of im2col'd patches: lane axis = K (contraction), dense.
            pl.BlockSpec((tm, K), lambda i: (i, 0)),
            # Weight / bias: constant index_map -> resident in VMEM across all steps.
            # (At real D sizes, single-buffering this spec would halve its VMEM cost.)
            pl.BlockSpec((K, D), lambda i: (0, 0)),
            pl.BlockSpec((1, D), lambda i: (0, 0)),
        ],
        out_specs=pl.BlockSpec((tm, D), lambda i: (i, 0)),
        compiler_params=pltpu.CompilerParams(
            dimension_semantics=("parallel",)),   # split row tiles over both v7x TCs
    )(x, w_mat, b_row)

    if m_pad != M:
        out = out[:M]
    # Rows are ordered (b, gi, gj) -> reshape to (B, num_patches, D) is metadata-only.
    return out.reshape(B, N, D)


# ---------------- demo / self-check ----------------

if __name__ == "__main__":
    key = jax.random.PRNGKey(0)
    k_im, k_w, k_b = jax.random.split(key, 3)

    B, C = 2, CHANNELS
    H, W = IMAGE_SIZE
    P, D = PATCH_SIZE, EMBED_DIM
    gh, gw = H // P, W // P
    num_patches = gh * gw

    im = jax.random.normal(k_im, (B, C, H, W), dtype=jnp.float32)            # NCHW
    w_conv = 0.02 * jax.random.normal(k_w, (D, C, P, P), dtype=jnp.float32)  # nn.Conv2d.weight
    b_conv = 0.02 * jax.random.normal(k_b, (D,), dtype=jnp.float32)          # nn.Conv2d.bias

    w_mat, b_row = prepare_patch_proj(w_conv, b_conv)                        # one-time prep

    fwd = jax.jit(functools.partial(patch_embedding, patch_size=P))
    out = jax.block_until_ready(fwd(im, w_mat, b_row))

    assert out.shape == (B, num_patches, D), out.shape
    assert bool(jnp.all(jnp.isfinite(out)))

    # Reference: the exact PyTorch forward (strided conv -> flatten(2) -> transpose(1, 2)),
    # computed in f32.  bf16 MXU operands + f32 accumulation keep |diff| well under 2e-2.
    ref = jax.lax.conv_general_dilated(
        im, w_conv, window_strides=(P, P), padding="VALID",
        dimension_numbers=("NCHW", "OIHW", "NCHW"))                          # (B, D, gh, gw)
    ref = ref + b_conv.reshape(1, D, 1, 1)
    ref = ref.reshape(B, D, num_patches).transpose(0, 2, 1)                  # (B, N, D)

    max_err = float(jnp.max(jnp.abs(out - ref)))
    assert max_err < 2e-2, f"mismatch vs conv reference: max|diff|={max_err}"

    print("KERNEL_OK")
</pallas_src>

<mosaic_0001>
module attributes {stable_mosaic.version = 11 : i64} {
  func.func @_patch_proj_kernel(%arg0: i32, %arg1: memref<8x256xbf16, #tpu.memory_space<vmem>>, %arg2: memref<256x128xbf16, #tpu.memory_space<vmem>>, %arg3: memref<1x128xf32, #tpu.memory_space<vmem>>, %arg4: memref<8x128xf32, #tpu.memory_space<vmem>>) attributes {dimension_semantics = [#tpu.dimension_semantics<parallel>], iteration_bounds = array<i64: 1>, scalar_prefetch = 0 : i64, scratch_operands = 0 : i64, tpu.core_type = #tpu.core_type<tc>, window_params = [{transform_indices = @transform_0, window_bounds = array<i64: 8, 256>}, {pipeline_mode = #tpu.pipeline_mode<synchronous>, transform_indices = @transform_1, window_bounds = array<i64: 256, 128>}, {pipeline_mode = #tpu.pipeline_mode<synchronous>, transform_indices = @transform_2, window_bounds = array<i64: 1, 128>}, {transform_indices = @transform_3, window_bounds = array<i64: 8, 128>}]} {
    %c0 = arith.constant 0 : index
    %c0_0 = arith.constant 0 : index
    %0 = vector.load %arg1[%c0, %c0_0] : memref<8x256xbf16, #tpu.memory_space<vmem>>, vector<8x256xbf16>
    %c0_1 = arith.constant 0 : index
    %c0_2 = arith.constant 0 : index
    %1 = vector.load %arg2[%c0_1, %c0_2] : memref<256x128xbf16, #tpu.memory_space<vmem>>, vector<256x128xbf16>
    %cst = arith.constant dense<0.000000e+00> : vector<8x128xf32>
    %2 = tpu.matmul %0, %1, %cst {dimension_numbers = #tpu.dot_dimension_numbers<[1], [0], [0], [1], [0, 0, 1, 1], [], []>} : vector<8x256xbf16>, vector<256x128xbf16>, vector<8x128xf32> -> vector<8x128xf32>
    %c0_3 = arith.constant 0 : index
    %c0_4 = arith.constant 0 : index
    %3 = vector.load %arg3[%c0_3, %c0_4] : memref<1x128xf32, #tpu.memory_space<vmem>>, vector<1x128xf32>
    %4 = vector.broadcast %3 : vector<1x128xf32> to vector<8x128xf32>
    %5 = arith.addf %2, %4 : vector<8x128xf32>
    %c0_5 = arith.constant 0 : index
    %c0_6 = arith.constant 0 : index
    %6 = vector.load %arg4[%c0_5, %c0_6] : memref<8x128xf32, #tpu.memory_space<vmem>>, vector<8x128xf32>
    tpu.vector_store %arg4[%c0_5, %c0_6], %5 {strides = array<i32>} : memref<8x128xf32, #tpu.memory_space<vmem>>, vector<8x128xf32>,
    return
  }
  func.func @transform_0(%arg0: i32) -> (i32, i32) {
    %c0_i32 = arith.constant 0 : i32
    %c0_i32_0 = arith.constant 0 : i32
    return %arg0, %c0_i32 : i32, i32
  }
  func.func @transform_1(%arg0: i32) -> (i32, i32) {
    %c0_i32 = arith.constant 0 : i32
    %c0_i32_0 = arith.constant 0 : i32
    %c0_i32_1 = arith.constant 0 : i32
    return %c0_i32, %c0_i32_0 : i32, i32
  }
  func.func @transform_2(%arg0: i32) -> (i32, i32) {
    %c0_i32 = arith.constant 0 : i32
    %c0_i32_0 = arith.constant 0 : i32
    %c0_i32_1 = arith.constant 0 : i32
    return %c0_i32, %c0_i32_0 : i32, i32
  }
  func.func @transform_3(%arg0: i32) -> (i32, i32) {
    %c0_i32 = arith.constant 0 : i32
    %c0_i32_0 = arith.constant 0 : i32
    return %arg0, %c0_i32 : i32, i32
  }
}

</mosaic_0001>

<bundles_post_ra>
// kernel: patch_embedding.1
= control target key start
LH: loop header
LB: loop body
LE: loop exit
PB: predicated region body
PF: predicated region fallthrough
CT: control target
= control target key end

     0   :  { %s385_s0 = inlined_call_operand.vmem [shape: bf16[8,256], index: 0, kind: input, shape index: {}]   ;;  %s386_s1 = inlined_call_operand.vmem [shape: bf16[256,128], index: 1, kind: input, shape index: {}]   ;;  %s387_s2 = inlined_call_operand.vmem [shape: f32[1,128], index: 2, kind: input, shape index: {}]   ;;  %s388_s3 = inlined_call_operand.hbm [shape: f32[8,128], index: 3, kind: output, shape index: {}]  }
   0x1   :  { %v256_v0 = vld [vmem:[%s386_s1 + $0x40] sm:$0xff]   ;;  %v258_v2 = vld [vmem:[%s386_s1 + $0x48] sm:$0xff]   ;;  %v260_v4 = vld [vmem:[%s386_s1 + $0x50] sm:$0xff]  }
   0x2   :  { %v257_v1 = vld [vmem:[%s386_s1] sm:$0xff]   ;;  %233 = vmatprep.subr.bf16.mxu0 %v256_v0  ;;  %v259_v3 = vld [vmem:[%s386_s1 + $0x8] sm:$0xff]   ;;  %v261_v5 = vld [vmem:[%s386_s1 + $0x10] sm:$0xff]  }
   0x3   :  { %234 = vmatpush3.bf16.msra.mxu0 %v257_v1  ;;  %v262_v6 = vld [vmem:[%s386_s1 + $0x58] sm:$0xff]   ;;  %v264_v8 = vld [vmem:[%s386_s1 + $0x60] sm:$0xff]   ;;  %v266_v10 = vld [vmem:[%s386_s1 + $0x68] sm:$0xff]  }
   0x4   :  { %235 = vmatprep.subr.bf16.mxu0 %v258_v2  ;;  %v263_v7 = vld [vmem:[%s386_s1 + $0x18] sm:$0xff]   ;;  %v265_v9 = vld [vmem:[%s386_s1 + $0x20] sm:$0xff]  }
   0x5   :  { %v16_v11 = vld [vmem:[%s385_s0] sm:$0xff] }
   0x7   :  { %236 = vmatpush3.bf16.msra.mxu0 %v259_v3 }
   0x8   :  { %237 = vmatprep.subr.bf16.mxu0 %v260_v4 }
   0xb   :  { %238 = vmatpush3.bf16.msra.mxu0 %v261_v5 }
   0xc   :  { %239 = vmatprep.subr.bf16.mxu0 %v262_v6 }
   0xf   :  { %240 = vmatpush3.bf16.msra.mxu0 %v263_v7 }
  0x10   :  { %241 = vmatprep.subr.bf16.mxu0 %v264_v8 }
  0x11   :  { %8 = vsyncpa [#allocation3], 0  ;;  %v216_v12 = vcombine.high %v16_v11, %v16_v11  ;;  %v267_v13 = vld [vmem:[%s386_s1 + $0x28] sm:$0xff]   ;;  %v268_v14 = vld [vmem:[%s386_s1 + $0x70] sm:$0xff]   ;;  %v215_v18 = vcombine.low %v16_v11, %v16_v11  ;;  %s298_s20 = smov [#allocation2]  }
  0x12   :  { %v269_v15 = vld [vmem:[%s386_s1 + $0x30] sm:$0xff]   ;;  %v270_v16 = vld [vmem:[%s386_s1 + $0x78] sm:$0xff]   ;;  %v214_v21 = vld [vmem:[%s387_s2] ss:$0 sm:$0xff]  ;;  %s206_s21 = sshll.u32 %s298_s20, 4  ;;  %s207_s21 = int_to_ptr.vmem [resolvable:$true] %s206_s21 }
  0x13   :  { %242 = vmatpush3.bf16.msra.mxu0 %v265_v9  ;;  %191 = vmatprep.mubr.bf16.mxu0 %v216_v12  ;;  %v271_v17 = vld [vmem:[%s386_s1 + $0x38] sm:$0xff]   ;;  %s274_s22 = scalar_lea.vmem %s207_s21, 128  ;;  %p279_p1 = scmp.lt.s32.totalorder %s207_s21, %s207_s21 }
  0x14   :  { %243 = vmatprep.subr.bf16.mxu0 %v266_v10  ;;  %p275_p0 = scmp.ne.s32.totalorder %s207_s21, %s274_s22  ;;  %p280_p2 = scmp.lt.s32.totalorder %s274_s22, %s274_s22 }
  0x16   :  { %p281_p3 = por %p280_p2, %p279_p1 }
  0x17   :  { %244 = vmatpush3.bf16.msra.mxu0 %v267_v13 }
  0x18   :  { %245 = vmatprep.subr.bf16.mxu0 %v268_v14  ;;  %p282_p4 = pnand %p281_p3, %p275_p0 }
  0x1b   :  { %246 = vmatpush3.bf16.msra.mxu0 %v269_v15 }
  0x1c   :  { %247 = vmatprep.subr.bf16.mxu0 %v270_v16 }
  0x1f   :  { %248 = vmatpush3.bf16.msra.mxu0 %v271_v17 }
  0x22   :  { %192 = vmatmul.mubr.bf16.vlgmr.msra.gmra.mrb[0].mxu0 %v215_v18 }
  0xf5   :  { %v249_v19 = vpop.f32.mrb[0].mxu0 }
  0xf6   :  { %v250_v20 = vpop.f32.mrb[1].mxu0 }
  0xf7   :  { %v251_v22 = vadd.f32 %v250_v20, %v249_v19  ;;  %v252_v23 = vpop.f32.mrb[2].mxu0 }
  0xf8   :  { %v253_v24 = vpop.f32.mrb[3].mxu0 }
  0xf9   :  { %v194_v25 = vadd.f32 %v251_v22, %v214_v21 }
  0xfb   :  { %199 = vst [vmem:[#allocation2] sm:$0xff] %v194_v25 }
  0xfc   :  { %285 = shalt.err (!%p282_p4)
}
  0xfd   :  { %s286_s24 = scalar_lea.hbm %s388_s3, 128 }
  0xfe   :  { %p287_p5 = scmp.ne.s32.totalorder %s388_s3, %s286_s24  ;;  %p290_p6 = scmp.lt.u32.totalorder %s286_s24, %s388_s3 }
 0x100   :  { %p292_p7 = pnand %p290_p6, %p287_p5 }
 0x102   :  { %295 = shalt.err (!%p292_p7)
}
 0x103   :  { %209 = dma.vmem_to_hbm [thread:$0]  %s207_s21, 128, %s388_s3, [#allocation3]  }
 0x104   :  { %296 = dma.done.wait [#allocation3], 128  }
 0x105   :  { %297 = vsyncadd [#allocation3], 4294967168 }
 0x106   :  { %213 = vsyncpa [#allocation3], 1 }

</bundles_post_ra>
